<compile_context>
chip_gen: v5e
topology: v5e:2x2
jax: 0.10.0
libtpu: 0.0.40
codegen_flags: <defaults>
</compile_context>

<pallas_src>
import jax
import jax.numpy as jnp
from jax.experimental import pallas as pl
from jax.experimental.pallas import tpu as pltpu

_MIB = 1024 * 1024


def _complex_proj_kernel(xr_ref, xi_ref, wr_ref, wi_ref, br_ref, bi_ref,
                         or_ref, oi_ref):
    """Two independent Linear(+bias)+ReLU projections (real / imag parts).

    Grid is (batch_tiles, k_tiles), K axis last.  The f32 output blocks are
    resident across the K axis and act as accumulators (init at k==0, bias+ReLU
    at the last K step).  MXU accumulates in f32; epilogue is f32.
    """
    k = pl.program_id(1)

    @pl.when(k == 0)
    def _init():
        or_ref[...] = jnp.zeros_like(or_ref)
        oi_ref[...] = jnp.zeros_like(oi_ref)

    or_ref[...] += jnp.dot(xr_ref[...], wr_ref[...],
                           preferred_element_type=jnp.float32)
    oi_ref[...] += jnp.dot(xi_ref[...], wi_ref[...],
                           preferred_element_type=jnp.float32)

    @pl.when(k == pl.num_programs(1) - 1)
    def _finalize():
        or_ref[...] = jnp.maximum(or_ref[...] + br_ref[...], 0.0)
        oi_ref[...] = jnp.maximum(oi_ref[...] + bi_ref[...], 0.0)


def _default_vmem_limit_bytes():
    """Generation-aware scoped-VMEM limit: 3/4 of physical (cap 96 MiB)."""
    try:
        phys = int(pltpu.get_tpu_info().vmem_capacity_bytes)
        return int(min(3 * phys // 4, 96 * _MIB))
    except Exception:
        return 32 * _MIB  # known-safe on v5e / v6e / v7x


def _round_down_16(x):
    # bf16 packs two rows per sublane (one bf16 vreg is [16, 128]).
    return max(16, (x // 16) * 16)


def _choose_k_tile(K, N, vmem_limit):
    """Keep both bf16 weight tiles within ~1/3 of the scoped-VMEM budget."""
    if 2 * K * N * 2 <= vmem_limit // 3:
        return K
    tk = 1024
    while tk > 256 and 2 * tk * N * 2 > vmem_limit // 3:
        tk //= 2
    return min(K, tk)


def _max_batch_tile(tk, N, vmem_limit, weight_bufs):
    """Largest batch tile whose buffers fit the scoped-VMEM budget."""
    weight_bytes = weight_bufs * 2 * (tk * N * 2 + N * 4)   # bf16 weights + f32 biases
    per_row = 2 * (2 * tk * 2) + 2 * (2 * N * 4)            # dbl-buf bf16 x + f32 out
    budget = int(0.85 * vmem_limit) - weight_bytes
    return max(16, budget // per_row)


def complex_separated_combination(xs, w_re, b_re, w_im, b_im, *,
                                  block_rows=None, k_block=None,
                                  compute_dtype=jnp.bfloat16,
                                  vmem_limit_bytes=None,
                                  single_buffer_resident=True,
                                  return_parts=False):
    """JAX/Pallas version of ComplexSeparatedCombination.forward.

    xs: sequence of (B, d_i) arrays; at least one must be complex.
    w_re / w_im: (sum_i d_i, N) independent real / imag projection weights
                 (pre-cast to `compute_dtype` outside the step to avoid a
                 per-call HBM round-trip).
    b_re / b_im: (N,) or (1, N) biases (torch.nn.Linear layout accepted).
    block_rows:  optional batch-tile cap (auto-derived from VMEM otherwise);
                 sweep 1024-4096 on v5e/v6e, ~1024 on v7x for production batches.
    k_block:     optional K-tile (multiple of 128); auto escape hatch kicks in
                 when resident weights would not fit VMEM.
    compute_dtype: MXU input dtype (bf16 by default; pass jnp.float32 for
                 bit-closer fidelity to the PyTorch f32 semantics).
    return_parts: if True, return (re, im) f32 parts and skip the complex64
                 recombine pass (use when the consumer re-splits real/imag).
    returns: (B, N) complex64, or the (re, im) pair if return_parts.
    """
    if not any(jnp.iscomplexobj(x) for x in xs):
        raise ValueError(
            "ComplexSeparatedCombination is a combination for complex representations, "
            "but none of the inputs was of complex data type."
        )

    # split_complex / passthrough + ConcatCombination (XLA glue; allow_input_fusion
    # below lets XLA fold it into the kernel input DMA where possible).
    xs_real = [(jnp.real(x) if jnp.iscomplexobj(x) else x).astype(compute_dtype)
               for x in xs]
    xs_imag = [(jnp.imag(x) if jnp.iscomplexobj(x) else x).astype(compute_dtype)
               for x in xs]
    x_re = jnp.concatenate(xs_real, axis=-1)
    x_im = jnp.concatenate(xs_imag, axis=-1)

    B, K = x_re.shape
    N = w_re.shape[-1]

    # torch.nn.Linear stores bias as (N,); accept (N,) or (1, N).
    b_re_f = jnp.asarray(b_re, jnp.float32).reshape(1, N)
    b_im_f = jnp.asarray(b_im, jnp.float32).reshape(1, N)
    # No-op when the caller pre-cast the weights.
    w_re_c = w_re if w_re.dtype == compute_dtype else w_re.astype(compute_dtype)
    w_im_c = w_im if w_im.dtype == compute_dtype else w_im.astype(compute_dtype)

    vmem_limit = (vmem_limit_bytes if vmem_limit_bytes is not None
                  else _default_vmem_limit_bytes())

    # --- K tiling (escape hatch for very large resident weights) ------------
    tk = _choose_k_tile(K, N, vmem_limit) if k_block is None else min(int(k_block), K)
    if tk < K and tk % 128 != 0:
        raise ValueError("k_block must be a multiple of 128 (vreg lane width).")
    nk = -(-K // tk)
    if nk * tk != K:
        # Zero-pad K so every K tile is full; zero rows/cols contribute nothing.
        pad = nk * tk - K
        x_re = jnp.pad(x_re, ((0, 0), (0, pad)))
        x_im = jnp.pad(x_im, ((0, 0), (0, pad)))
        w_re_c = jnp.pad(w_re_c, ((0, pad), (0, 0)))
        w_im_c = jnp.pad(w_im_c, ((0, pad), (0, 0)))

    weights_resident = (nk == 1)
    weight_bufs = 1 if (weights_resident and single_buffer_resident) else 2

    # --- batch tiling --------------------------------------------------------
    tb_cap = _max_batch_tile(tk, N, vmem_limit, weight_bufs)
    tb = min(B, tb_cap if block_rows is None else min(int(block_rows), tb_cap))
    if tb < B:
        tb = min(_round_down_16(tb), B)
    if B >= 32 and tb >= B:
        # >=2 parallel batch tiles so ("parallel", ...) shards across v7x's 2 TCs.
        tb = min(tb, ((-(-B // 2) + 15) // 16) * 16)
    nb = -(-B // tb)
    grid = (nb, nk)

    cost = pl.CostEstimate(
        flops=4 * B * K * N,
        transcendentals=0,
        bytes_accessed=(2 * B * K * x_re.dtype.itemsize
                        + 2 * K * N * w_re_c.dtype.itemsize
                        + 2 * N * 4
                        + 2 * B * N * 4),
    )

    def _build(resident_single_buffer):
        if resident_single_buffer:
            def w_spec():
                return pl.BlockSpec((tk, N), lambda i, k: (k, 0),
                                    pipeline_mode=pl.Buffered(1))

            def b_spec():
                return pl.BlockSpec((1, N), lambda i, k: (0, 0),
                                    pipeline_mode=pl.Buffered(1))
        else:
            def w_spec():
                return pl.BlockSpec((tk, N), lambda i, k: (k, 0))

            def b_spec():
                return pl.BlockSpec((1, N), lambda i, k: (0, 0))

        return pl.pallas_call(
            _complex_proj_kernel,
            out_shape=(jax.ShapeDtypeStruct((B, N), jnp.float32),
                       jax.ShapeDtypeStruct((B, N), jnp.float32)),
            grid=grid,
            in_specs=[
                pl.BlockSpec((tb, tk), lambda i, k: (i, k)),   # x_re tile (pipelined)
                pl.BlockSpec((tb, tk), lambda i, k: (i, k)),   # x_im tile (pipelined)
                w_spec(),                                      # w_re (resident)
                w_spec(),                                      # w_im (resident)
                b_spec(),                                      # b_re (resident)
                b_spec(),                                      # b_im (resident)
            ],
            out_specs=(
                pl.BlockSpec((tb, N), lambda i, k: (i, 0)),    # resident over K axis
                pl.BlockSpec((tb, N), lambda i, k: (i, 0)),
            ),
            compiler_params=pltpu.CompilerParams(
                dimension_semantics=("parallel", "arbitrary"),
                vmem_limit_bytes=int(vmem_limit),
                allow_input_fusion=[True] * 6,
            ),
            cost_estimate=cost,
        )

    use_single = weights_resident and single_buffer_resident
    args = (x_re, x_im, w_re_c, w_im_c, b_re_f, b_im_f)
    try:
        out_re, out_im = _build(use_single)(*args)
    except Exception:
        if not use_single:
            raise
        # Fallback: default double-buffered resident operands.
        out_re, out_im = _build(False)(*args)

    if return_parts:
        # Consumers that re-split real/imag can skip the complex64 round-trip.
        return out_re, out_im
    # TODO(synk): combine_complex (complex64 recombine) and the complex split/concat
    # above have no Pallas TPU equivalent (no complex dtype in-kernel); XLA glue.
    return jax.lax.complex(out_re, out_im)


def _reference(xs, w_re, b_re, w_im, b_im, compute_dtype=jnp.float32):
    xs_real = [(jnp.real(x) if jnp.iscomplexobj(x) else x).astype(compute_dtype)
               for x in xs]
    xs_imag = [(jnp.imag(x) if jnp.iscomplexobj(x) else x).astype(compute_dtype)
               for x in xs]
    x_re = jnp.concatenate(xs_real, axis=-1)
    x_im = jnp.concatenate(xs_imag, axis=-1)
    n = w_re.shape[-1]
    y_re = jnp.maximum(
        jnp.dot(x_re, w_re.astype(compute_dtype), preferred_element_type=jnp.float32)
        + jnp.asarray(b_re, jnp.float32).reshape(1, n), 0.0)
    y_im = jnp.maximum(
        jnp.dot(x_im, w_im.astype(compute_dtype), preferred_element_type=jnp.float32)
        + jnp.asarray(b_im, jnp.float32).reshape(1, n), 0.0)
    return jax.lax.complex(y_re, y_im)


if __name__ == "__main__":
    key = jax.random.PRNGKey(0)

    def make_case(k, B, D_complex, D_real, N):
        k0, k1, k2, k3, k4, k5, k6 = jax.random.split(k, 7)
        x0 = jax.lax.complex(
            jax.random.normal(k0, (B, D_complex), jnp.float32),
            jax.random.normal(k1, (B, D_complex), jnp.float32),
        )
        x1 = jax.random.normal(k2, (B, D_real), jnp.float32)
        K = D_complex + D_real
        scale = 1.0 / float(K) ** 0.5
        w_re = jax.random.uniform(k3, (K, N), jnp.float32, -scale, scale)
        b_re = jax.random.uniform(k4, (N,), jnp.float32, -scale, scale)
        w_im = jax.random.uniform(k5, (K, N), jnp.float32, -scale, scale)
        b_im = jax.random.uniform(k6, (N,), jnp.float32, -scale, scale)
        return [x0, x1], w_re, b_re, w_im, b_im

    def check(out, xs, w_re, b_re, w_im, b_im):
        assert out.dtype == jnp.complex64
        ref_bf16 = _reference(xs, w_re, b_re, w_im, b_im, jnp.bfloat16)
        ref_f32 = _reference(xs, w_re, b_re, w_im, b_im, jnp.float32)
        assert jnp.allclose(jnp.real(out), jnp.real(ref_bf16), atol=2e-3, rtol=2e-3)
        assert jnp.allclose(jnp.imag(out), jnp.imag(ref_bf16), atol=2e-3, rtol=2e-3)
        assert jnp.allclose(jnp.real(out), jnp.real(ref_f32), atol=5e-2, rtol=5e-2)
        assert jnp.allclose(jnp.imag(out), jnp.imag(ref_f32), atol=5e-2, rtol=5e-2)

    key1, key2 = jax.random.split(key)

    # Case 1: resident (single-buffered) weights, 2 parallel batch tiles, 1 K tile.
    xs, w_re, b_re, w_im, b_im = make_case(key1, B=32, D_complex=64, D_real=64, N=128)
    out = jax.block_until_ready(
        complex_separated_combination(xs, w_re, b_re, w_im, b_im, block_rows=16))
    assert out.shape == (32, 128)
    check(out, xs, w_re, b_re, w_im, b_im)

    # Case 2: K-tiled accumulator path (grid = 2 batch tiles x 2 K tiles).
    xs2, w_re2, b_re2, w_im2, b_im2 = make_case(key2, B=32, D_complex=128,
                                                D_real=128, N=128)
    out2 = jax.block_until_ready(
        complex_separated_combination(xs2, w_re2, b_re2, w_im2, b_im2,
                                      block_rows=16, k_block=128))
    assert out2.shape == (32, 128)
    check(out2, xs2, w_re2, b_re2, w_im2, b_im2)

    # Module semantics: at least one complex input is required.
    try:
        complex_separated_combination([jnp.ones((4, 8), jnp.float32)],
                                      w_re[:8], b_re, w_im[:8], b_im)
        raise AssertionError("expected ValueError for all-real inputs")
    except ValueError:
        pass

    print("KERNEL_OK")
</pallas_src>

<mosaic_0001>
module attributes {stable_mosaic.version = 11 : i64} {
  func.func @_complex_proj_kernel(%arg0: i32, %arg1: i32, %arg2: memref<16x128xbf16, #tpu.memory_space<vmem>>, %arg3: memref<16x128xbf16, #tpu.memory_space<vmem>>, %arg4: memref<128x128xbf16, #tpu.memory_space<vmem>>, %arg5: memref<128x128xbf16, #tpu.memory_space<vmem>>, %arg6: memref<1x128xf32, #tpu.memory_space<vmem>>, %arg7: memref<1x128xf32, #tpu.memory_space<vmem>>, %arg8: memref<16x128xf32, #tpu.memory_space<vmem>>, %arg9: memref<16x128xf32, #tpu.memory_space<vmem>>) attributes {dimension_semantics = [#tpu.dimension_semantics<parallel>, #tpu.dimension_semantics<arbitrary>], iteration_bounds = array<i64: 2, 1>, scalar_prefetch = 0 : i64, scratch_operands = 0 : i64, tpu.core_type = #tpu.core_type<tc>, window_params = [{transform_indices = @transform_0, window_bounds = array<i64: 16, 128>}, {transform_indices = @transform_1, window_bounds = array<i64: 16, 128>}, {pipeline_mode = #tpu.pipeline_mode<synchronous>, transform_indices = @transform_2, window_bounds = array<i64: 128, 128>}, {pipeline_mode = #tpu.pipeline_mode<synchronous>, transform_indices = @transform_3, window_bounds = array<i64: 128, 128>}, {pipeline_mode = #tpu.pipeline_mode<synchronous>, transform_indices = @transform_4, window_bounds = array<i64: 1, 128>}, {pipeline_mode = #tpu.pipeline_mode<synchronous>, transform_indices = @transform_5, window_bounds = array<i64: 1, 128>}, {transform_indices = @transform_6, window_bounds = array<i64: 16, 128>}, {transform_indices = @transform_7, window_bounds = array<i64: 16, 128>}]} {
    %c0_i32 = arith.constant 0 : i32
    %0 = arith.cmpi eq, %arg1, %c0_i32 : i32
    %1 = arith.extui %0 : i1 to i32
    %c0_i32_0 = arith.constant 0 : i32
    %2 = arith.cmpi ne, %1, %c0_i32_0 : i32
    scf.if %2 {
      %cst_19 = arith.constant 0.000000e+00 : f32
      %18 = vector.broadcast %cst_19 : f32 to vector<16x128xf32>
      %c0_20 = arith.constant 0 : index
      %c0_21 = arith.constant 0 : index
      %19 = vector.load %arg8[%c0_20, %c0_21] : memref<16x128xf32, #tpu.memory_space<vmem>>, vector<16x128xf32>
      tpu.vector_store %arg8[%c0_20, %c0_21], %18 {strides = array<i32>} : memref<16x128xf32, #tpu.memory_space<vmem>>, vector<16x128xf32>,
      %cst_22 = arith.constant 0.000000e+00 : f32
      %20 = vector.broadcast %cst_22 : f32 to vector<16x128xf32>
      %c0_23 = arith.constant 0 : index
      %c0_24 = arith.constant 0 : index
      %21 = vector.load %arg9[%c0_23, %c0_24] : memref<16x128xf32, #tpu.memory_space<vmem>>, vector<16x128xf32>
      tpu.vector_store %arg9[%c0_23, %c0_24], %20 {strides = array<i32>} : memref<16x128xf32, #tpu.memory_space<vmem>>, vector<16x128xf32>,
    } else {
    }
    %c0 = arith.constant 0 : index
    %c0_1 = arith.constant 0 : index
    %3 = vector.load %arg8[%c0, %c0_1] : memref<16x128xf32, #tpu.memory_space<vmem>>, vector<16x128xf32>
    %c0_2 = arith.constant 0 : index
    %c0_3 = arith.constant 0 : index
    %4 = vector.load %arg2[%c0_2, %c0_3] : memref<16x128xbf16, #tpu.memory_space<vmem>>, vector<16x128xbf16>
    %c0_4 = arith.constant 0 : index
    %c0_5 = arith.constant 0 : index
    %5 = vector.load %arg4[%c0_4, %c0_5] : memref<128x128xbf16, #tpu.memory_space<vmem>>, vector<128x128xbf16>
    %cst = arith.constant dense<0.000000e+00> : vector<16x128xf32>
    %6 = tpu.matmul %4, %5, %cst {dimension_numbers = #tpu.dot_dimension_numbers<[1], [0], [0], [1], [0, 0, 1, 1], [], []>} : vector<16x128xbf16>, vector<128x128xbf16>, vector<16x128xf32> -> vector<16x128xf32>
    %7 = arith.addf %3, %6 : vector<16x128xf32>
    %c0_6 = arith.constant 0 : index
    %c0_7 = arith.constant 0 : index
    %8 = vector.load %arg8[%c0_6, %c0_7] : memref<16x128xf32, #tpu.memory_space<vmem>>, vector<16x128xf32>
    tpu.vector_store %arg8[%c0_6, %c0_7], %7 {strides = array<i32>} : memref<16x128xf32, #tpu.memory_space<vmem>>, vector<16x128xf32>,
    %c0_8 = arith.constant 0 : index
    %c0_9 = arith.constant 0 : index
    %9 = vector.load %arg9[%c0_8, %c0_9] : memref<16x128xf32, #tpu.memory_space<vmem>>, vector<16x128xf32>
    %c0_10 = arith.constant 0 : index
    %c0_11 = arith.constant 0 : index
    %10 = vector.load %arg3[%c0_10, %c0_11] : memref<16x128xbf16, #tpu.memory_space<vmem>>, vector<16x128xbf16>
    %c0_12 = arith.constant 0 : index
    %c0_13 = arith.constant 0 : index
    %11 = vector.load %arg5[%c0_12, %c0_13] : memref<128x128xbf16, #tpu.memory_space<vmem>>, vector<128x128xbf16>
    %cst_14 = arith.constant dense<0.000000e+00> : vector<16x128xf32>
    %12 = tpu.matmul %10, %11, %cst_14 {dimension_numbers = #tpu.dot_dimension_numbers<[1], [0], [0], [1], [0, 0, 1, 1], [], []>} : vector<16x128xbf16>, vector<128x128xbf16>, vector<16x128xf32> -> vector<16x128xf32>
    %13 = arith.addf %9, %12 : vector<16x128xf32>
    %c0_15 = arith.constant 0 : index
    %c0_16 = arith.constant 0 : index
    %14 = vector.load %arg9[%c0_15, %c0_16] : memref<16x128xf32, #tpu.memory_space<vmem>>, vector<16x128xf32>
    tpu.vector_store %arg9[%c0_15, %c0_16], %13 {strides = array<i32>} : memref<16x128xf32, #tpu.memory_space<vmem>>, vector<16x128xf32>,
    %c0_i32_17 = arith.constant 0 : i32
    %15 = arith.cmpi eq, %arg1, %c0_i32_17 : i32
    %16 = arith.extui %15 : i1 to i32
    %c0_i32_18 = arith.constant 0 : i32
    %17 = arith.cmpi ne, %16, %c0_i32_18 : i32
    scf.if %17 {
      %c0_19 = arith.constant 0 : index
      %c0_20 = arith.constant 0 : index
      %18 = vector.load %arg8[%c0_19, %c0_20] : memref<16x128xf32, #tpu.memory_space<vmem>>, vector<16x128xf32>
      %c0_21 = arith.constant 0 : index
      %c0_22 = arith.constant 0 : index
      %19 = vector.load %arg6[%c0_21, %c0_22] : memref<1x128xf32, #tpu.memory_space<vmem>>, vector<1x128xf32>
      %20 = vector.broadcast %19 : vector<1x128xf32> to vector<16x128xf32>
      %21 = arith.addf %18, %20 : vector<16x128xf32>
      %cst_23 = arith.constant 0.000000e+00 : f32
      %22 = vector.broadcast %cst_23 : f32 to vector<16x128xf32>
      %23 = arith.maximumf %21, %22 : vector<16x128xf32>
      %c0_24 = arith.constant 0 : index
      %c0_25 = arith.constant 0 : index
      %24 = vector.load %arg8[%c0_24, %c0_25] : memref<16x128xf32, #tpu.memory_space<vmem>>, vector<16x128xf32>
      tpu.vector_store %arg8[%c0_24, %c0_25], %23 {strides = array<i32>} : memref<16x128xf32, #tpu.memory_space<vmem>>, vector<16x128xf32>,
      %c0_26 = arith.constant 0 : index
      %c0_27 = arith.constant 0 : index
      %25 = vector.load %arg9[%c0_26, %c0_27] : memref<16x128xf32, #tpu.memory_space<vmem>>, vector<16x128xf32>
      %c0_28 = arith.constant 0 : index
      %c0_29 = arith.constant 0 : index
      %26 = vector.load %arg7[%c0_28, %c0_29] : memref<1x128xf32, #tpu.memory_space<vmem>>, vector<1x128xf32>
      %27 = vector.broadcast %26 : vector<1x128xf32> to vector<16x128xf32>
      %28 = arith.addf %25, %27 : vector<16x128xf32>
      %cst_30 = arith.constant 0.000000e+00 : f32
      %29 = vector.broadcast %cst_30 : f32 to vector<16x128xf32>
      %30 = arith.maximumf %28, %29 : vector<16x128xf32>
      %c0_31 = arith.constant 0 : index
      %c0_32 = arith.constant 0 : index
      %31 = vector.load %arg9[%c0_31, %c0_32] : memref<16x128xf32, #tpu.memory_space<vmem>>, vector<16x128xf32>
      tpu.vector_store %arg9[%c0_31, %c0_32], %30 {strides = array<i32>} : memref<16x128xf32, #tpu.memory_space<vmem>>, vector<16x128xf32>,
    } else {
    }
    return
  }
  func.func @transform_0(%arg0: i32, %arg1: i32) -> (i32, i32) {
    %c0_i32 = arith.constant 0 : i32
    return %arg0, %arg1 : i32, i32
  }
  func.func @transform_1(%arg0: i32, %arg1: i32) -> (i32, i32) {
    %c0_i32 = arith.constant 0 : i32
    return %arg0, %arg1 : i32, i32
  }
  func.func @transform_2(%arg0: i32, %arg1: i32) -> (i32, i32) {
    %c0_i32 = arith.constant 0 : i32
    %c0_i32_0 = arith.constant 0 : i32
    return %arg1, %c0_i32 : i32, i32
  }
  func.func @transform_3(%arg0: i32, %arg1: i32) -> (i32, i32) {
    %c0_i32 = arith.constant 0 : i32
    %c0_i32_0 = arith.constant 0 : i32
    return %arg1, %c0_i32 : i32, i32
  }
  func.func @transform_4(%arg0: i32, %arg1: i32) -> (i32, i32) {
    %c0_i32 = arith.constant 0 : i32
    %c0_i32_0 = arith.constant 0 : i32
    %c0_i32_1 = arith.constant 0 : i32
    return %c0_i32, %c0_i32_0 : i32, i32
  }
  func.func @transform_5(%arg0: i32, %arg1: i32) -> (i32, i32) {
    %c0_i32 = arith.constant 0 : i32
    %c0_i32_0 = arith.constant 0 : i32
    %c0_i32_1 = arith.constant 0 : i32
    return %c0_i32, %c0_i32_0 : i32, i32
  }
  func.func @transform_6(%arg0: i32, %arg1: i32) -> (i32, i32) {
    %c0_i32 = arith.constant 0 : i32
    %c0_i32_0 = arith.constant 0 : i32
    return %arg0, %c0_i32 : i32, i32
  }
  func.func @transform_7(%arg0: i32, %arg1: i32) -> (i32, i32) {
    %c0_i32 = arith.constant 0 : i32
    %c0_i32_0 = arith.constant 0 : i32
    return %arg0, %c0_i32 : i32, i32
  }
}

module attributes {stable_mosaic.version = 11 : i64} {
  func.func @_complex_proj_kernel(%arg0: i32, %arg1: i32, %arg2: memref<16x128xbf16, #tpu.memory_space<vmem>>, %arg3: memref<16x128xbf16, #tpu.memory_space<vmem>>, %arg4: memref<128x128xbf16, #tpu.memory_space<vmem>>, %arg5: memref<128x128xbf16, #tpu.memory_space<vmem>>, %arg6: memref<1x128xf32, #tpu.memory_space<vmem>>, %arg7: memref<1x128xf32, #tpu.memory_space<vmem>>, %arg8: memref<16x128xf32, #tpu.memory_space<vmem>>, %arg9: memref<16x128xf32, #tpu.memory_space<vmem>>) attributes {dimension_semantics = [#tpu.dimension_semantics<parallel>, #tpu.dimension_semantics<arbitrary>], iteration_bounds = array<i64: 2, 1>, scalar_prefetch = 0 : i64, scratch_operands = 0 : i64, tpu.core_type = #tpu.core_type<tc>, window_params = [{transform_indices = @transform_0, window_bounds = array<i64: 16, 128>}, {transform_indices = @transform_1, window_bounds = array<i64: 16, 128>}, {transform_indices = @transform_2, window_bounds = array<i64: 128, 128>}, {transform_indices = @transform_3, window_bounds = array<i64: 128, 128>}, {pipeline_mode = #tpu.pipeline_mode<synchronous>, transform_indices = @transform_4, window_bounds = array<i64: 1, 128>}, {pipeline_mode = #tpu.pipeline_mode<synchronous>, transform_indices = @transform_5, window_bounds = array<i64: 1, 128>}, {transform_indices = @transform_6, window_bounds = array<i64: 16, 128>}, {transform_indices = @transform_7, window_bounds = array<i64: 16, 128>}]} {
    %c0_i32 = arith.constant 0 : i32
    %0 = arith.cmpi eq, %arg1, %c0_i32 : i32
    %1 = arith.extui %0 : i1 to i32
    %c0_i32_0 = arith.constant 0 : i32
    %2 = arith.cmpi ne, %1, %c0_i32_0 : i32
    scf.if %2 {
      %cst_19 = arith.constant 0.000000e+00 : f32
      %18 = vector.broadcast %cst_19 : f32 to vector<16x128xf32>
      %c0_20 = arith.constant 0 : index
      %c0_21 = arith.constant 0 : index
      %19 = vector.load %arg8[%c0_20, %c0_21] : memref<16x128xf32, #tpu.memory_space<vmem>>, vector<16x128xf32>
      tpu.vector_store %arg8[%c0_20, %c0_21], %18 {strides = array<i32>} : memref<16x128xf32, #tpu.memory_space<vmem>>, vector<16x128xf32>,
      %cst_22 = arith.constant 0.000000e+00 : f32
      %20 = vector.broadcast %cst_22 : f32 to vector<16x128xf32>
      %c0_23 = arith.constant 0 : index
      %c0_24 = arith.constant 0 : index
      %21 = vector.load %arg9[%c0_23, %c0_24] : memref<16x128xf32, #tpu.memory_space<vmem>>, vector<16x128xf32>
      tpu.vector_store %arg9[%c0_23, %c0_24], %20 {strides = array<i32>} : memref<16x128xf32, #tpu.memory_space<vmem>>, vector<16x128xf32>,
    } else {
    }
    %c0 = arith.constant 0 : index
    %c0_1 = arith.constant 0 : index
    %3 = vector.load %arg8[%c0, %c0_1] : memref<16x128xf32, #tpu.memory_space<vmem>>, vector<16x128xf32>
    %c0_2 = arith.constant 0 : index
    %c0_3 = arith.constant 0 : index
    %4 = vector.load %arg2[%c0_2, %c0_3] : memref<16x128xbf16, #tpu.memory_space<vmem>>, vector<16x128xbf16>
    %c0_4 = arith.constant 0 : index
    %c0_5 = arith.constant 0 : index
    %5 = vector.load %arg4[%c0_4, %c0_5] : memref<128x128xbf16, #tpu.memory_space<vmem>>, vector<128x128xbf16>
    %cst = arith.constant dense<0.000000e+00> : vector<16x128xf32>
    %6 = tpu.matmul %4, %5, %cst {dimension_numbers = #tpu.dot_dimension_numbers<[1], [0], [0], [1], [0, 0, 1, 1], [], []>} : vector<16x128xbf16>, vector<128x128xbf16>, vector<16x128xf32> -> vector<16x128xf32>
    %7 = arith.addf %3, %6 : vector<16x128xf32>
    %c0_6 = arith.constant 0 : index
    %c0_7 = arith.constant 0 : index
    %8 = vector.load %arg8[%c0_6, %c0_7] : memref<16x128xf32, #tpu.memory_space<vmem>>, vector<16x128xf32>
    tpu.vector_store %arg8[%c0_6, %c0_7], %7 {strides = array<i32>} : memref<16x128xf32, #tpu.memory_space<vmem>>, vector<16x128xf32>,
    %c0_8 = arith.constant 0 : index
    %c0_9 = arith.constant 0 : index
    %9 = vector.load %arg9[%c0_8, %c0_9] : memref<16x128xf32, #tpu.memory_space<vmem>>, vector<16x128xf32>
    %c0_10 = arith.constant 0 : index
    %c0_11 = arith.constant 0 : index
    %10 = vector.load %arg3[%c0_10, %c0_11] : memref<16x128xbf16, #tpu.memory_space<vmem>>, vector<16x128xbf16>
    %c0_12 = arith.constant 0 : index
    %c0_13 = arith.constant 0 : index
    %11 = vector.load %arg5[%c0_12, %c0_13] : memref<128x128xbf16, #tpu.memory_space<vmem>>, vector<128x128xbf16>
    %cst_14 = arith.constant dense<0.000000e+00> : vector<16x128xf32>
    %12 = tpu.matmul %10, %11, %cst_14 {dimension_numbers = #tpu.dot_dimension_numbers<[1], [0], [0], [1], [0, 0, 1, 1], [], []>} : vector<16x128xbf16>, vector<128x128xbf16>, vector<16x128xf32> -> vector<16x128xf32>
    %13 = arith.addf %9, %12 : vector<16x128xf32>
    %c0_15 = arith.constant 0 : index
    %c0_16 = arith.constant 0 : index
    %14 = vector.load %arg9[%c0_15, %c0_16] : memref<16x128xf32, #tpu.memory_space<vmem>>, vector<16x128xf32>
    tpu.vector_store %arg9[%c0_15, %c0_16], %13 {strides = array<i32>} : memref<16x128xf32, #tpu.memory_space<vmem>>, vector<16x128xf32>,
    %c0_i32_17 = arith.constant 0 : i32
    %15 = arith.cmpi eq, %arg1, %c0_i32_17 : i32
    %16 = arith.extui %15 : i1 to i32
    %c0_i32_18 = arith.constant 0 : i32
    %17 = arith.cmpi ne, %16, %c0_i32_18 : i32
    scf.if %17 {
      %c0_19 = arith.constant 0 : index
      %c0_20 = arith.constant 0 : index
      %18 = vector.load %arg8[%c0_19, %c0_20] : memref<16x128xf32, #tpu.memory_space<vmem>>, vector<16x128xf32>
      %c0_21 = arith.constant 0 : index
      %c0_22 = arith.constant 0 : index
      %19 = vector.load %arg6[%c0_21, %c0_22] : memref<1x128xf32, #tpu.memory_space<vmem>>, vector<1x128xf32>
      %20 = vector.broadcast %19 : vector<1x128xf32> to vector<16x128xf32>
      %21 = arith.addf %18, %20 : vector<16x128xf32>
      %cst_23 = arith.constant 0.000000e+00 : f32
      %22 = vector.broadcast %cst_23 : f32 to vector<16x128xf32>
      %23 = arith.maximumf %21, %22 : vector<16x128xf32>
      %c0_24 = arith.constant 0 : index
      %c0_25 = arith.constant 0 : index
      %24 = vector.load %arg8[%c0_24, %c0_25] : memref<16x128xf32, #tpu.memory_space<vmem>>, vector<16x128xf32>
      tpu.vector_store %arg8[%c0_24, %c0_25], %23 {strides = array<i32>} : memref<16x128xf32, #tpu.memory_space<vmem>>, vector<16x128xf32>,
      %c0_26 = arith.constant 0 : index
      %c0_27 = arith.constant 0 : index
      %25 = vector.load %arg9[%c0_26, %c0_27] : memref<16x128xf32, #tpu.memory_space<vmem>>, vector<16x128xf32>
      %c0_28 = arith.constant 0 : index
      %c0_29 = arith.constant 0 : index
      %26 = vector.load %arg7[%c0_28, %c0_29] : memref<1x128xf32, #tpu.memory_space<vmem>>, vector<1x128xf32>
      %27 = vector.broadcast %26 : vector<1x128xf32> to vector<16x128xf32>
      %28 = arith.addf %25, %27 : vector<16x128xf32>
      %cst_30 = arith.constant 0.000000e+00 : f32
      %29 = vector.broadcast %cst_30 : f32 to vector<16x128xf32>
      %30 = arith.maximumf %28, %29 : vector<16x128xf32>
      %c0_31 = arith.constant 0 : index
      %c0_32 = arith.constant 0 : index
      %31 = vector.load %arg9[%c0_31, %c0_32] : memref<16x128xf32, #tpu.memory_space<vmem>>, vector<16x128xf32>
      tpu.vector_store %arg9[%c0_31, %c0_32], %30 {strides = array<i32>} : memref<16x128xf32, #tpu.memory_space<vmem>>, vector<16x128xf32>,
    } else {
    }
    return
  }
  func.func @transform_0(%arg0: i32, %arg1: i32) -> (i32, i32) {
    %c0_i32 = arith.constant 0 : i32
    return %arg0, %arg1 : i32, i32
  }
  func.func @transform_1(%arg0: i32, %arg1: i32) -> (i32, i32) {
    %c0_i32 = arith.constant 0 : i32
    return %arg0, %arg1 : i32, i32
  }
  func.func @transform_2(%arg0: i32, %arg1: i32) -> (i32, i32) {
    %c0_i32 = arith.constant 0 : i32
    %c0_i32_0 = arith.constant 0 : i32
    return %arg1, %c0_i32 : i32, i32
  }
  func.func @transform_3(%arg0: i32, %arg1: i32) -> (i32, i32) {
    %c0_i32 = arith.constant 0 : i32
    %c0_i32_0 = arith.constant 0 : i32
    return %arg1, %c0_i32 : i32, i32
  }
  func.func @transform_4(%arg0: i32, %arg1: i32) -> (i32, i32) {
    %c0_i32 = arith.constant 0 : i32
    %c0_i32_0 = arith.constant 0 : i32
    %c0_i32_1 = arith.constant 0 : i32
    return %c0_i32, %c0_i32_0 : i32, i32
  }
  func.func @transform_5(%arg0: i32, %arg1: i32) -> (i32, i32) {
    %c0_i32 = arith.constant 0 : i32
    %c0_i32_0 = arith.constant 0 : i32
    %c0_i32_1 = arith.constant 0 : i32
    return %c0_i32, %c0_i32_0 : i32, i32
  }
  func.func @transform_6(%arg0: i32, %arg1: i32) -> (i32, i32) {
    %c0_i32 = arith.constant 0 : i32
    %c0_i32_0 = arith.constant 0 : i32
    return %arg0, %c0_i32 : i32, i32
  }
  func.func @transform_7(%arg0: i32, %arg1: i32) -> (i32, i32) {
    %c0_i32 = arith.constant 0 : i32
    %c0_i32_0 = arith.constant 0 : i32
    return %arg0, %c0_i32 : i32, i32
  }
}

</mosaic_0001>

<bundles_post_ra>
// kernel: tpu_custom_call.1
= control target key start
LH: loop header
LB: loop body
LE: loop exit
PB: predicated region body
PF: predicated region fallthrough
CT: control target
= control target key end

     0   :  { %s1573_s0 = inlined_call_operand.hbm [shape: bf16[32,128], index: 0, kind: input, shape index: {}]   ;;  %s1574_s1 = inlined_call_operand.hbm [shape: bf16[32,128], index: 1, kind: input, shape index: {}]   ;;  %s1575_s2 = inlined_call_operand.hbm [shape: bf16[128,128], index: 2, kind: input, shape index: {}]   ;;  %s1576_s3 = inlined_call_operand.hbm [shape: bf16[128,128], index: 3, kind: input, shape index: {}]   ;;  %s1577_s4 = inlined_call_operand.vmem [shape: f32[1,128], index: 4, kind: input, shape index: {}]   ;;  %s1578_s5 = inlined_call_operand.vmem [shape: f32[1,128], index: 5, kind: input, shape index: {}]   ;;  %s1579_s6 = inlined_call_operand.hbm [shape: f32[32,128], index: 6, kind: output, shape index: {0}]   ;;  %s1580_s7 = inlined_call_operand.hbm [shape: f32[32,128], index: 7, kind: output, shape index: {1}]  }
   0x1   :  { %1590 = sst [smem:[#allocation25_spill]] %s1575_s2 }
   0x2   :  { %1591 = sst [smem:[#allocation26_spill]] %s1576_s3 }
   0x3   :  { %13 = vsyncpa [#allocation3], 0 }
   0x4   :  { %15 = vsyncpa [#allocation3 + $0x1], 0 }
   0x5   :  { %16 = vsyncpa [#allocation6], 0 }
   0x6   :  { %18 = vsyncpa [#allocation6 + $0x1], 0 }
   0x7   :  { %19 = vsyncpa [#allocation9], 0 }
   0x8   :  { %20 = vsyncpa [#allocation4], 0 }
   0x9   :  { %22 = vsyncpa [#allocation4 + $0x1], 0 }
   0xa   :  { %23 = vsyncpa [#allocation12], 0 }
   0xb   :  { %25 = vsyncpa [#allocation12 + $0x1], 0  ;;  %s1361_s24 = smov 0   ;;  %s1363_s25 = smov 0  }
   0xc   :  { %s1365_s26 = smov 0   ;;  %s1367_s27 = smov 0  }
   0xd   :  { %s1369_s28 = smov 0   ;;  %s1371_s29 = smov 0  }
   0xe LB: > { %1592 = sst [smem:[#allocation19_spill]] %s1293_s24  ;;  %s1392_s30 = sadd.s32 4294967295, %s1313_s29   ;;  %s1313_s29 = sphi %s1371_s29, %s31_s29   ;;  %s1309_s28 = sphi %s1369_s28, %s1612_s28   ;;  %s1305_s27 = sphi %s1367_s27, %s1611_s27   ;;  %s1301_s26 = sphi %s1365_s26, %s1610_s26   ;;  %s1297_s25 = sphi %s1363_s25, %s1614_s25   ;;  %s1293_s24 = sphi %s1361_s24, %s1613_s24  }
   0xf   : > { %1593 = sst [smem:[#allocation20_spill]] %s1301_s26  ;;  %s847_s8 = sadd.s32 4294967294, %s1313_s29  }
  0x10   : > { %1594 = sst [smem:[#allocation21_spill]] %s1309_s28  ;;  %p65_p0 = scmp.ne.s32.totalorder %s1297_s25, %s1293_s24 }
  0x11   : > { %p66_p1 = scmp.eq.s32.totalorder %s1392_s30, 0  ;;  %p211_p2 = scmp.eq.s32.totalorder %s1392_s30, 1 }
  0x12   : > { %p217_p3 = scmp.eq.s32.totalorder %s847_s8, 1  ;;  %p848_p5 = scmp.ge.s32.totalorder %s1313_s29, 1 }
  0x13   : > { %p1401_p4 = por %p66_p1, %p65_p0  ;;  %p250_p7 = scmp.lt.s32.totalorder %s1313_s29, 3 }
  0x14   : > { %p1406_p6 = por %p217_p3, %p65_p0  ;;  %s1598_s2 = sld [smem:[#allocation25_spill]] }
  0x15   : > { %p1414_p8 = pnand %p848_p5, %p250_p7  ;;  %s1315_s15 = smov [#allocation7]  }
  0x16   : > { %s1596_s10 = scalar_select %p1406_p6, 1, 0 }
  0x17   : > { %p983_p9 = pneg %p1414_p8  ;;  %s266_s16 = sshll.u32 %s1315_s15, 4  ;;  %s267_s16 = int_to_ptr.vmem [resolvable:$true] %s266_s16 }
  0x18   : > { %1597 = sst [smem:[#allocation22_spill]] %s1596_s10  ;;  %p851_p11 = scmp.ge.s32.totalorder %s1313_s29, 2 }
  0x19   : > { %p984_p10 = pnand %p983_p9, %p66_p1  ;;  %s1600_s3 = sld [smem:[#allocation26_spill]] }
  0x1a   : > { %s264_s13 = sshll.u32 %s1598_s2, 4  ;;  %s1581_s20 = smov 64   ;;  %s265_s13 = int_to_ptr.hbm [resolvable:$true] %s264_s13 }
  0x1b   : > { %s1583_s21 = smov 4   ;;  %s1318_s22 = smov [#allocation8]  }
  0x1c   : > { %986 = dma.hbm_to_vmem [thread:$0]  (!%p984_p10), %s265_s13, 1024, %s267_s16, [#allocation6], %s1581_s20, %s1581_s20, %s1583_s21  }
  0x1d   : > { %s283_s23 = sshll.u32 %s1318_s22, 4  ;;  %s43_s8 = sadd.s32 1, %s1309_s28  ;;  %s284_s23 = int_to_ptr.vmem [resolvable:$true] %s283_s23 }
  0x1e   : > { %s52_s11 = sadd.s32 1, %s1301_s26  ;;  %p45_p12 = scmp.ge.s32.totalorder %s43_s8, 2 }
  0x1f   : > { %s281_s19 = sshll.u32 %s1600_s3, 4  ;;  %p59_p13 = scmp.ne.s32.totalorder %s1301_s26, %s1297_s25  ;;  %s282_s19 = int_to_ptr.hbm [resolvable:$true] %s281_s19 }
  0x20   : > { %989 = dma.hbm_to_vmem [thread:$0]  (!%p984_p10), %s282_s19, 1024, %s284_s23, [#allocation9], %s1581_s20, %s1581_s20, %s1583_s21  }
  0x21   : > { %p60_p0 = scmp.eq.s32.totalorder %s1313_s29, 0  ;;  %p1006_p3 = scmp.lt.s32.totalorder %s1313_s29, 2 }
  0x22   : > { %s1616_s8 = smov (%p45_p12, %s43_s8), 0  ;;  %p1446_p7 = por %p211_p2, %p59_p13 }
  0x23   : > { %1601 = sst [smem:[#allocation23_spill]] %s1616_s8  ;;  %p1440_p5 = por %p60_p0, %p59_p13 }
  0x24   : > { %s47_s15 = ssub.s32 %s1309_s28, %s1616_s8  ;;  %s303_s16 = sand.u32 1, %s1301_s26  }
  0x25   : > { %p50_p9 = scmp.eq.s32.totalorder %s47_s15, 0  ;;  %s852_s17 = sshll.u32 %s303_s16, 3 }
  0x26   : > { %s945_s18 = sshll.u32 %s1309_s28, 3  ;;  %s307_s2 = scalar_lea.vmem [#allocation2], %s852_s17 }
  0x27   : > { %s1455_s19 = scalar_select %p50_p9, %s1301_s26, %s52_s11  }
  0x28   : > { %s313_s20 = scalar_lea.hbm %s1573_s0, %s945_s18  ;;  %s316_s3 = sshll.u32 %s307_s2, 4  ;;  %s317_s3 = int_to_ptr.vmem [resolvable:$true] %s316_s3 }
  0x29   : > { %1604 = sst [smem:[#allocation24_spill]] %s1455_s19  ;;  %s314_s21 = sshll.u32 %s313_s20, 4  ;;  %s315_s21 = int_to_ptr.hbm [resolvable:$true] %s314_s21 }
  0x2a   : > { %p991_p2 = pnand %p1006_p3, %p1440_p5  ;;  %s336_s15 = scalar_lea.hbm %s1574_s1, %s945_s18 }
  0x2b   : > { %s330_s28 = scalar_lea.vmem [#allocation5], %s852_s17  ;;  %s337_s19 = sshll.u32 %s336_s15, 4  ;;  %s338_s19 = int_to_ptr.hbm [resolvable:$true] %s337_s19 }
  0x2c   : > { %s339_s11 = sshll.u32 %s330_s28, 4  ;;  %s304_s26 = scalar_lea.sflag [#allocation3], %s303_s16  ;;  %s340_s11 = int_to_ptr.vmem [resolvable:$true] %s339_s11 }
  0x2d   : > { %s1605_s24 = smov 4   ;;  %s1606_s22 = smov 64  }
  0x2e   : > { %993 = dma.hbm_to_vmem [thread:$0]  (!%p991_p2), %s315_s21, 128, %s317_s3, %s304_s26, %s1606_s22, %s1606_s22, %s1605_s24  }
  0x2f   : > { %s326_s2 = sand.u32 1, %s1313_s29   ;;  %351 = sbr.rel (%p1414_p8) target bundleno = 247 (0xf7), region = 44 }
  0x30   : > { %s327_s20 = scalar_lea.sflag [#allocation6], %s326_s2  ;;  %s1477_s28 = sand.u32 (!%p1414_p8), 1, %s1297_s25  }
  0x31   : > { %996 = dma.hbm_to_vmem [thread:$0]  (!%p991_p2), %s338_s19, 128, %s340_s11, %s327_s20, %s1606_s22, %s1606_s22, %s1605_s24  }
  0x32   : > { %s859_s10 = sshll.u32 (!%p1414_p8), %s1477_s28, 3  ;;  %s354_s8 = scalar_lea.sflag (!%p1414_p8), [#allocation3], %s1477_s28 }
  0x33   : > { %s1481_s3 = scalar_lea.vmem (!%p1414_p8), [#allocation2], %s859_s10 }
  0x34   : > { %1268 = dma.done.wait (%p1401_p4), %s354_s8, 128  }
  0x35   : > { %1270 = vsyncadd (%p1401_p4), %s354_s8, 4294967168  ;;  %s363_s24 = sand.u32 1, %s1392_s30   ;;  %s1488_s14 = scalar_lea.vmem [#allocation5], %s859_s10 }
  0x36   : > { %s364_s26 = scalar_lea.sflag [#allocation6], %s363_s24 }
  0x37   : > { %1272 = dma.done.wait (%p1401_p4), %s364_s26, 128  }
  0x38   : > { %1274 = vsyncadd (%p1401_p4), %s364_s26, 4294967168 }
  0x39   : > { %1276 = dma.done.wait (%p66_p1), [#allocation6], 1024  }
  0x3a   : > { %1278 = vsyncadd (%p66_p1), [#allocation6], 4294966272 }
  0x3b   : > { %1280 = dma.done.wait (%p66_p1), [#allocation9], 1024  }
  0x3c   : > { %1282 = vsyncadd (%p66_p1), [#allocation9], 4294966272  ;;  %v955_v0 = vld [vmem:[#allocation7 + $0x38] sm:$0xff]  ;;  %v954_v2 = vld [vmem:[#allocation7 + $0x30] sm:$0xff]  ;;  %s863_s16 = sshll.u32 %s1477_s28, 4  ;;  %s965_s17 = sshll.u32 %s1305_s27, 4 }
  0x3d   : > { %v964_v1 = vld [vmem:[#allocation8 + $0x38] sm:$0xff]  ;;  %507 = vmatpush.bf16.msra.mxu0 %v955_v0  ;;  %v963_v3 = vld [vmem:[#allocation8 + $0x30] sm:$0xff]  ;;  %v953_v4 = vld [vmem:[#allocation7 + $0x28] sm:$0xff]  ;;  %s411_s18 = scalar_lea.vmem [#allocation10], %s863_s16  ;;  %s661_s15 = scalar_lea.hbm %s1579_s6, %s965_s17 }
  0x3e   : > { %599 = vmatpush.bf16.msra.mxu1 %v964_v1  ;;  %v962_v5 = vld [vmem:[#allocation8 + $0x28] sm:$0xff]  ;;  %v952_v6 = vld [vmem:[#allocation7 + $0x20] sm:$0xff]  ;;  %v951_v8 = vld [vmem:[#allocation7 + $0x18] sm:$0xff]  ;;  %s418_s11 = scalar_lea.vmem [#allocation11], %s863_s16  ;;  %s662_s22 = sshll.u32 %s411_s18, 4  ;;  %s1518_s22 = int_to_ptr.vmem [resolvable:$true] %s662_s22 }
  0x3f   : > { %v961_v7 = vld [vmem:[#allocation8 + $0x20] sm:$0xff]  ;;  %v960_v9 = vld [vmem:[#allocation8 + $0x18] sm:$0xff]  ;;  %v950_v10 = vld [vmem:[#allocation7 + $0x10] sm:$0xff]  ;;  %s678_s10 = scalar_lea.hbm %s1580_s7, %s965_s17  ;;  %s664_s8 = sshll.u32 %s661_s15, 4  ;;  %s665_s8 = int_to_ptr.hbm [resolvable:$true] %s664_s8 }
  0x40   : > { %v959_v11 = vld [vmem:[#allocation8 + $0x10] sm:$0xff]  ;;  %v949_v12 = vld [vmem:[#allocation7 + $0x8] sm:$0xff]  ;;  %v948_v14 = vld [vmem:[#allocation7] sm:$0xff]  ;;  %s679_s27 = sshll.u32 %s418_s11, 4  ;;  %s645_s24 = scalar_lea.sflag [#allocation4], %s1477_s28  ;;  %s1520_s27 = int_to_ptr.vmem [resolvable:$true] %s679_s27 }
  0x41   : > { %508 = vmatpush.bf16.msra.mxu0 %v954_v2  ;;  %v958_v13 = vld [vmem:[#allocation8 + $0x8] sm:$0xff]  ;;  %v957_v15 = vld [vmem:[#allocation8] sm:$0xff]  ;;  %v956_v17 = vld [vmem:[%s1488_s14] sm:$0xff]  ;;  %s1201_s26 = sshra.s32 %s665_s8, 4  ;;  %s1207_s21 = scalar_lea.hbm %s1579_s6, 32  ;;  %s1202_s26 = int_to_ptr.hbm [resolvable:$true] %s1201_s26 }
  0x42   : > { %600 = vmatpush.bf16.msra.mxu1 %v963_v3  ;;  %v947_v16 = vld [vmem:[%s1481_s3] sm:$0xff]  ;;  %s681_s3 = sshll.u32 %s678_s10, 4  ;;  %s1203_s14 = scalar_lea.hbm %s1202_s26, 16  ;;  %s1522_s3 = int_to_ptr.hbm [resolvable:$true] %s681_s3 }
  0x43   : > { %v1065_v18 = vld [vmem:[%s1577_s4] ss:$0 sm:$0xff]  ;;  %p1204_p1 = scmp.ne.s32.totalorder %s1202_s26, %s1203_s14  ;;  %p1208_p10 = scmp.lt.s32.totalorder %s1202_s26, %s1579_s6 }
  0x44   : > { %v1066_v19 = vld [vmem:[%s1578_s5] ss:$0 sm:$0xff]  ;;  %p1209_p12 = scmp.lt.s32.totalorder %s1207_s21, %s1203_s14 }
  0x45   : > { %509 = vmatpush.bf16.msra.mxu0 %v953_v4  ;;  %p1205_p4 = pnand %p1204_p1, %p1446_p7 }
  0x46   : > { %601 = vmatpush.bf16.msra.mxu1 %v962_v5  ;;  %p1210_p13 = por %p1209_p12, %p1208_p10 }
  0x47   : > { %p1206_p8 = pneg %p1205_p4 }
  0x49   : > { %510 = vmatpush.bf16.msra.mxu0 %v952_v6  ;;  %p1211_p0 = pnand %p1210_p13, %p1206_p8 }
  0x4a   : > { %602 = vmatpush.bf16.msra.mxu1 %v961_v7 }
  0x4d   : > { %511 = vmatpush.bf16.msra.mxu0 %v951_v8 }
  0x4e   : > { %603 = vmatpush.bf16.msra.mxu1 %v960_v9 }
  0x51   : > { %512 = vmatpush.bf16.msra.mxu0 %v950_v10 }
  0x52   : > { %604 = vmatpush.bf16.msra.mxu1 %v959_v11 }
  0x55   : > { %513 = vmatpush.bf16.msra.mxu0 %v949_v12 }
  0x56   : > { %605 = vmatpush.bf16.msra.mxu1 %v958_v13 }
  0x59   : > { %514 = vmatpush.bf16.msra.mxu0 %v948_v14 }
  0x5a   : > { %606 = vmatpush.bf16.msra.mxu1 %v957_v15 }
  0x5c   : > { %515 = vmatmul.bf16.vlgmr.msra.gmra.mxu0 %v947_v16 }
  0x5d   : > { %607 = vmatmul.bf16.vlgmr.msra.gmra.mxu1 %v956_v17 }
  0xd9   : > { %v516_v20 = vpop.f32.mrf.mxu0 }
  0xda   : > { %v608_v21 = vpop.f32.mrf.mxu1  ;;  %v626_v22 = vadd.f32 %v1065_v18, %v516_v20 }
  0xdb   : > { %v638_v23 = vadd.f32 %v1066_v19, %v608_v21 }
  0xdc   : > { %v628_v24 = vmax.f32 %v626_v22, 0.0 }
  0xdd   : > { %v640_v25 = vmax.f32 %v638_v23, 0.0 }
  0xde   : > { %630 = vst [vmem:[%s411_s18] sm:$0xff] %v628_v24 }
  0xdf   : > { %642 = vst [vmem:[%s418_s11] sm:$0xff] %v640_v25 }
  0xe1   : > { %v518_v26 = vpop.f32.mrf.mxu0 }
  0xe2   : > { %v610_v27 = vpop.f32.mrf.mxu1  ;;  %v627_v28 = vadd.f32 %v1065_v18, %v518_v26 }
  0xe3   : > { %v639_v29 = vadd.f32 %v1066_v19, %v610_v27 }
  0xe4   : > { %v629_v30 = vmax.f32 %v627_v28, 0.0 }
  0xe5   : > { %v641_v31 = vmax.f32 %v639_v29, 0.0 }
  0xe6   : > { %631 = vst [vmem:[%s411_s18 + $0x8] sm:$0xff] %v629_v30 }
  0xe7   : > { %643 = vst [vmem:[%s418_s11 + $0x8] sm:$0xff] %v641_v31 }
  0xe8   : > { %1214 = shalt.err (!%p1211_p0)
}
  0xe9   : > { %s1319_s17 = smov 128   ;;  %s1320_s18 = smov 8  }
  0xea   : > { %979 = dma.vmem_to_hbm [thread:$0]  (%p1446_p7), %s1518_s22, 256, %s665_s8, %s645_s24, %s1319_s17, %s1319_s17, %s1320_s18  }
  0xeb   : > { %s650_s19 = scalar_lea.sflag [#allocation12], %s1477_s28  ;;  %s1229_s23 = sshra.s32 %s1522_s3, 4  ;;  %s1230_s23 = int_to_ptr.hbm [resolvable:$true] %s1229_s23 }
  0xec   : > { %s1231_s15 = scalar_lea.hbm %s1230_s23, 16  ;;  %s1235_s20 = scalar_lea.hbm %s1580_s7, 32 }
  0xed   : > { %p1232_p3 = scmp.ne.s32.totalorder %s1230_s23, %s1231_s15  ;;  %p1236_p2 = scmp.lt.s32.totalorder %s1230_s23, %s1580_s7 }
  0xee   : > { %p1237_p1 = scmp.lt.s32.totalorder %s1235_s20, %s1231_s15 }
  0xef   : > { %p1233_p5 = pnand %p1232_p3, %p1446_p7 }
  0xf0   : > { %p1238_p4 = por %p1237_p1, %p1236_p2 }
  0xf1   : > { %p1234_p9 = pneg %p1233_p5 }
  0xf3   : > { %p1239_p8 = pnand %p1238_p4, %p1234_p9 }
  0xf5   : > { %1242 = shalt.err (!%p1239_p8)
}
  0xf6   : > { %980 = dma.vmem_to_hbm [thread:$0]  (%p1446_p7), %s1520_s27, 256, %s1522_s3, %s650_s19, %s1319_s17, %s1319_s17, %s1320_s18  }
  0xf7 PF: > { %s1607_s28 = sld [smem:[#allocation19_spill]]  ;;  %p998_p10 = pnand %p851_p11, %p1406_p6 }
  0xf9   : > { %p999_p12 = pneg %p998_p10 }
  0xfd   : > { %s696_s8 = sand.u32 1, %s1607_s28  }
  0xfe   : > { %s697_s24 = scalar_lea.sflag [#allocation4], %s696_s8 }
  0xff   : > { %1284 = dma.done.wait (%p999_p12), %s697_s24, 256  }
 0x100   : > { %1286 = vsyncadd (%p999_p12), %s697_s24, 4294967040  ;;  %s707_s14 = scalar_lea.sflag [#allocation12], %s696_s8 }
 0x101   : > { %1288 = dma.done.wait (%p999_p12), %s707_s14, 256  }
 0x102   : > { %1290 = vsyncadd (%p999_p12), %s707_s14, 4294967040  ;;  %s31_s29 = sadd.s32 1, %s1313_s29   ;;  %s1609_s13 = sld [smem:[#allocation20_spill]] }
 0x103   : > { %p28_p13 = scmp.ge.s32.totalorder %s31_s29, 4   ;;  %s1610_s26 = sld [smem:[#allocation24_spill]] }
 0x104   : > { %s1611_s27 = sld [smem:[#allocation21_spill]]  ;;  %s1613_s24 = smov %s1297_s25 }
 0x105   : > { %s1612_s28 = sld [smem:[#allocation23_spill]]  ;;  %30 = sbr.rel (!%p28_p13) target bundleno = 14 (0xe), region = 137 }
 0x108   : > { %s1614_s25 = smov %s1609_s13 }
 0x10a   :  { %713 = vsyncpa [#allocation3], 1 }
 0x10b   :  { %715 = vsyncpa [#allocation3 + $0x1], 1 }
 0x10c   :  { %716 = vsyncpa [#allocation6], 1 }
 0x10d   :  { %718 = vsyncpa [#allocation6 + $0x1], 1 }
 0x10e   :  { %719 = vsyncpa [#allocation9], 1 }
 0x10f   :  { %720 = vsyncpa [#allocation4], 1 }
 0x110   :  { %722 = vsyncpa [#allocation4 + $0x1], 1 }
 0x111   :  { %723 = vsyncpa [#allocation12], 1 }
 0x112   :  { %725 = vsyncpa [#allocation12 + $0x1], 1 }

// kernel: tpu_custom_call.1
= control target key start
LH: loop header
LB: loop body
LE: loop exit
PB: predicated region body
PF: predicated region fallthrough
CT: control target
= control target key end

     0   :  { %s1573_s0 = inlined_call_operand.hbm [shape: bf16[32,128], index: 0, kind: input, shape index: {}]   ;;  %s1574_s1 = inlined_call_operand.hbm [shape: bf16[32,128], index: 1, kind: input, shape index: {}]   ;;  %s1575_s2 = inlined_call_operand.hbm [shape: bf16[128,128], index: 2, kind: input, shape index: {}]   ;;  %s1576_s3 = inlined_call_operand.hbm [shape: bf16[128,128], index: 3, kind: input, shape index: {}]   ;;  %s1577_s4 = inlined_call_operand.vmem [shape: f32[1,128], index: 4, kind: input, shape index: {}]   ;;  %s1578_s5 = inlined_call_operand.vmem [shape: f32[1,128], index: 5, kind: input, shape index: {}]   ;;  %s1579_s6 = inlined_call_operand.hbm [shape: f32[32,128], index: 6, kind: output, shape index: {0}]   ;;  %s1580_s7 = inlined_call_operand.hbm [shape: f32[32,128], index: 7, kind: output, shape index: {1}]  }
   0x1   :  { %1590 = sst [smem:[#allocation25_spill]] %s1575_s2 }
   0x2   :  { %1591 = sst [smem:[#allocation26_spill]] %s1576_s3 }
   0x3   :  { %13 = vsyncpa [#allocation3], 0 }
   0x4   :  { %15 = vsyncpa [#allocation3 + $0x1], 0 }
   0x5   :  { %16 = vsyncpa [#allocation6], 0 }
   0x6   :  { %18 = vsyncpa [#allocation6 + $0x1], 0 }
   0x7   :  { %19 = vsyncpa [#allocation9], 0 }
   0x8   :  { %20 = vsyncpa [#allocation4], 0 }
   0x9   :  { %22 = vsyncpa [#allocation4 + $0x1], 0 }
   0xa   :  { %23 = vsyncpa [#allocation12], 0 }
   0xb   :  { %25 = vsyncpa [#allocation12 + $0x1], 0  ;;  %s1361_s24 = smov 0   ;;  %s1363_s25 = smov 0  }
   0xc   :  { %s1365_s26 = smov 0   ;;  %s1367_s27 = smov 0  }
   0xd   :  { %s1369_s28 = smov 0   ;;  %s1371_s29 = smov 0  }
   0xe LB: > { %1592 = sst [smem:[#allocation19_spill]] %s1293_s24  ;;  %s1392_s30 = sadd.s32 4294967295, %s1313_s29   ;;  %s1313_s29 = sphi %s1371_s29, %s31_s29   ;;  %s1309_s28 = sphi %s1369_s28, %s1612_s28   ;;  %s1305_s27 = sphi %s1367_s27, %s1611_s27   ;;  %s1301_s26 = sphi %s1365_s26, %s1610_s26   ;;  %s1297_s25 = sphi %s1363_s25, %s1614_s25   ;;  %s1293_s24 = sphi %s1361_s24, %s1613_s24  }
   0xf   : > { %1593 = sst [smem:[#allocation20_spill]] %s1301_s26  ;;  %s847_s8 = sadd.s32 4294967294, %s1313_s29  }
  0x10   : > { %1594 = sst [smem:[#allocation21_spill]] %s1309_s28  ;;  %p65_p0 = scmp.ne.s32.totalorder %s1297_s25, %s1293_s24 }
  0x11   : > { %p66_p1 = scmp.eq.s32.totalorder %s1392_s30, 0  ;;  %p211_p2 = scmp.eq.s32.totalorder %s1392_s30, 1 }
  0x12   : > { %p217_p3 = scmp.eq.s32.totalorder %s847_s8, 1  ;;  %p848_p5 = scmp.ge.s32.totalorder %s1313_s29, 1 }
  0x13   : > { %p1401_p4 = por %p66_p1, %p65_p0  ;;  %p250_p7 = scmp.lt.s32.totalorder %s1313_s29, 3 }
  0x14   : > { %p1406_p6 = por %p217_p3, %p65_p0  ;;  %s1598_s2 = sld [smem:[#allocation25_spill]] }
  0x15   : > { %p1414_p8 = pnand %p848_p5, %p250_p7  ;;  %s1315_s15 = smov [#allocation7]  }
  0x16   : > { %s1596_s10 = scalar_select %p1406_p6, 1, 0 }
  0x17   : > { %p983_p9 = pneg %p1414_p8  ;;  %s266_s16 = sshll.u32 %s1315_s15, 4  ;;  %s267_s16 = int_to_ptr.vmem [resolvable:$true] %s266_s16 }
  0x18   : > { %1597 = sst [smem:[#allocation22_spill]] %s1596_s10  ;;  %p851_p11 = scmp.ge.s32.totalorder %s1313_s29, 2 }
  0x19   : > { %p984_p10 = pnand %p983_p9, %p66_p1  ;;  %s1600_s3 = sld [smem:[#allocation26_spill]] }
  0x1a   : > { %s264_s13 = sshll.u32 %s1598_s2, 4  ;;  %s1581_s20 = smov 64   ;;  %s265_s13 = int_to_ptr.hbm [resolvable:$true] %s264_s13 }
  0x1b   : > { %s1583_s21 = smov 4   ;;  %s1318_s22 = smov [#allocation8]  }
  0x1c   : > { %986 = dma.hbm_to_vmem [thread:$0]  (!%p984_p10), %s265_s13, 1024, %s267_s16, [#allocation6], %s1581_s20, %s1581_s20, %s1583_s21  }
  0x1d   : > { %s283_s23 = sshll.u32 %s1318_s22, 4  ;;  %s43_s8 = sadd.s32 1, %s1309_s28  ;;  %s284_s23 = int_to_ptr.vmem [resolvable:$true] %s283_s23 }
  0x1e   : > { %s52_s11 = sadd.s32 1, %s1301_s26  ;;  %p45_p12 = scmp.ge.s32.totalorder %s43_s8, 2 }
  0x1f   : > { %s281_s19 = sshll.u32 %s1600_s3, 4  ;;  %p59_p13 = scmp.ne.s32.totalorder %s1301_s26, %s1297_s25  ;;  %s282_s19 = int_to_ptr.hbm [resolvable:$true] %s281_s19 }
  0x20   : > { %989 = dma.hbm_to_vmem [thread:$0]  (!%p984_p10), %s282_s19, 1024, %s284_s23, [#allocation9], %s1581_s20, %s1581_s20, %s1583_s21  }
  0x21   : > { %p60_p0 = scmp.eq.s32.totalorder %s1313_s29, 0  ;;  %p1006_p3 = scmp.lt.s32.totalorder %s1313_s29, 2 }
  0x22   : > { %s1616_s8 = smov (%p45_p12, %s43_s8), 0  ;;  %p1446_p7 = por %p211_p2, %p59_p13 }
  0x23   : > { %1601 = sst [smem:[#allocation23_spill]] %s1616_s8  ;;  %p1440_p5 = por %p60_p0, %p59_p13 }
  0x24   : > { %s47_s15 = ssub.s32 %s1309_s28, %s1616_s8  ;;  %s303_s16 = sand.u32 1, %s1301_s26  }
  0x25   : > { %p50_p9 = scmp.eq.s32.totalorder %s47_s15, 0  ;;  %s852_s17 = sshll.u32 %s303_s16, 3 }
  0x26   : > { %s945_s18 = sshll.u32 %s1309_s28, 3  ;;  %s307_s2 = scalar_lea.vmem [#allocation2], %s852_s17 }
  0x27   : > { %s1455_s19 = scalar_select %p50_p9, %s1301_s26, %s52_s11  }
  0x28   : > { %s313_s20 = scalar_lea.hbm %s1573_s0, %s945_s18  ;;  %s316_s3 = sshll.u32 %s307_s2, 4  ;;  %s317_s3 = int_to_ptr.vmem [resolvable:$true] %s316_s3 }
  0x29   : > { %1604 = sst [smem:[#allocation24_spill]] %s1455_s19  ;;  %s314_s21 = sshll.u32 %s313_s20, 4  ;;  %s315_s21 = int_to_ptr.hbm [resolvable:$true] %s314_s21 }
  0x2a   : > { %p991_p2 = pnand %p1006_p3, %p1440_p5  ;;  %s336_s15 = scalar_lea.hbm %s1574_s1, %s945_s18 }
  0x2b   : > { %s330_s28 = scalar_lea.vmem [#allocation5], %s852_s17  ;;  %s337_s19 = sshll.u32 %s336_s15, 4  ;;  %s338_s19 = int_to_ptr.hbm [resolvable:$true] %s337_s19 }
  0x2c   : > { %s339_s11 = sshll.u32 %s330_s28, 4  ;;  %s304_s26 = scalar_lea.sflag [#allocation3], %s303_s16  ;;  %s340_s11 = int_to_ptr.vmem [resolvable:$true] %s339_s11 }
  0x2d   : > { %s1605_s24 = smov 4   ;;  %s1606_s22 = smov 64  }
  0x2e   : > { %993 = dma.hbm_to_vmem [thread:$0]  (!%p991_p2), %s315_s21, 128, %s317_s3, %s304_s26, %s1606_s22, %s1606_s22, %s1605_s24  }
  0x2f   : > { %s326_s2 = sand.u32 1, %s1313_s29   ;;  %351 = sbr.rel (%p1414_p8) target bundleno = 247 (0xf7), region = 44 }
  0x30   : > { %s327_s20 = scalar_lea.sflag [#allocation6], %s326_s2  ;;  %s1477_s28 = sand.u32 (!%p1414_p8), 1, %s1297_s25  }
  0x31   : > { %996 = dma.hbm_to_vmem [thread:$0]  (!%p991_p2), %s338_s19, 128, %s340_s11, %s327_s20, %s1606_s22, %s1606_s22, %s1605_s24  }
  0x32   : > { %s859_s10 = sshll.u32 (!%p1414_p8), %s1477_s28, 3  ;;  %s354_s8 = scalar_lea.sflag (!%p1414_p8), [#allocation3], %s1477_s28 }
  0x33   : > { %s1481_s3 = scalar_lea.vmem (!%p1414_p8), [#allocation2], %s859_s10 }
  0x34   : > { %1268 = dma.done.wait (%p1401_p4), %s354_s8, 128  }
  0x35   : > { %1270 = vsyncadd (%p1401_p4), %s354_s8, 4294967168  ;;  %s363_s24 = sand.u32 1, %s1392_s30   ;;  %s1488_s14 = scalar_lea.vmem [#allocation5], %s859_s10 }
  0x36   : > { %s364_s26 = scalar_lea.sflag [#allocation6], %s363_s24 }
  0x37   : > { %1272 = dma.done.wait (%p1401_p4), %s364_s26, 128  }
  0x38   : > { %1274 = vsyncadd (%p1401_p4), %s364_s26, 4294967168 }
  0x39   : > { %1276 = dma.done.wait (%p66_p1), [#allocation6], 1024  }
  0x3a   : > { %1278 = vsyncadd (%p66_p1), [#allocation6], 4294966272 }
  0x3b   : > { %1280 = dma.done.wait (%p66_p1), [#allocation9], 1024  }
  0x3c   : > { %1282 = vsyncadd (%p66_p1), [#allocation9], 4294966272  ;;  %v955_v0 = vld [vmem:[#allocation7 + $0x38] sm:$0xff]  ;;  %v954_v2 = vld [vmem:[#allocation7 + $0x30] sm:$0xff]  ;;  %s863_s16 = sshll.u32 %s1477_s28, 4  ;;  %s965_s17 = sshll.u32 %s1305_s27, 4 }
  0x3d   : > { %v964_v1 = vld [vmem:[#allocation8 + $0x38] sm:$0xff]  ;;  %507 = vmatpush.bf16.msra.mxu0 %v955_v0  ;;  %v963_v3 = vld [vmem:[#allocation8 + $0x30] sm:$0xff]  ;;  %v953_v4 = vld [vmem:[#allocation7 + $0x28] sm:$0xff]  ;;  %s411_s18 = scalar_lea.vmem [#allocation10], %s863_s16  ;;  %s661_s15 = scalar_lea.hbm %s1579_s6, %s965_s17 }
  0x3e   : > { %599 = vmatpush.bf16.msra.mxu1 %v964_v1  ;;  %v962_v5 = vld [vmem:[#allocation8 + $0x28] sm:$0xff]  ;;  %v952_v6 = vld [vmem:[#allocation7 + $0x20] sm:$0xff]  ;;  %v951_v8 = vld [vmem:[#allocation7 + $0x18] sm:$0xff]  ;;  %s418_s11 = scalar_lea.vmem [#allocation11], %s863_s16  ;;  %s662_s22 = sshll.u32 %s411_s18, 4  ;;  %s1518_s22 = int_to_ptr.vmem [resolvable:$true] %s662_s22 }
  0x3f   : > { %v961_v7 = vld [vmem:[#allocation8 + $0x20] sm:$0xff]  ;;  %v960_v9 = vld [vmem:[#allocation8 + $0x18] sm:$0xff]  ;;  %v950_v10 = vld [vmem:[#allocation7 + $0x10] sm:$0xff]  ;;  %s678_s10 = scalar_lea.hbm %s1580_s7, %s965_s17  ;;  %s664_s8 = sshll.u32 %s661_s15, 4  ;;  %s665_s8 = int_to_ptr.hbm [resolvable:$true] %s664_s8 }
  0x40   : > { %v959_v11 = vld [vmem:[#allocation8 + $0x10] sm:$0xff]  ;;  %v949_v12 = vld [vmem:[#allocation7 + $0x8] sm:$0xff]  ;;  %v948_v14 = vld [vmem:[#allocation7] sm:$0xff]  ;;  %s679_s27 = sshll.u32 %s418_s11, 4  ;;  %s645_s24 = scalar_lea.sflag [#allocation4], %s1477_s28  ;;  %s1520_s27 = int_to_ptr.vmem [resolvable:$true] %s679_s27 }
  0x41   : > { %508 = vmatpush.bf16.msra.mxu0 %v954_v2  ;;  %v958_v13 = vld [vmem:[#allocation8 + $0x8] sm:$0xff]  ;;  %v957_v15 = vld [vmem:[#allocation8] sm:$0xff]  ;;  %v956_v17 = vld [vmem:[%s1488_s14] sm:$0xff]  ;;  %s1201_s26 = sshra.s32 %s665_s8, 4  ;;  %s1207_s21 = scalar_lea.hbm %s1579_s6, 32  ;;  %s1202_s26 = int_to_ptr.hbm [resolvable:$true] %s1201_s26 }
  0x42   : > { %600 = vmatpush.bf16.msra.mxu1 %v963_v3  ;;  %v947_v16 = vld [vmem:[%s1481_s3] sm:$0xff]  ;;  %s681_s3 = sshll.u32 %s678_s10, 4  ;;  %s1203_s14 = scalar_lea.hbm %s1202_s26, 16  ;;  %s1522_s3 = int_to_ptr.hbm [resolvable:$true] %s681_s3 }
  0x43   : > { %v1065_v18 = vld [vmem:[%s1577_s4] ss:$0 sm:$0xff]  ;;  %p1204_p1 = scmp.ne.s32.totalorder %s1202_s26, %s1203_s14  ;;  %p1208_p10 = scmp.lt.s32.totalorder %s1202_s26, %s1579_s6 }
  0x44   : > { %v1066_v19 = vld [vmem:[%s1578_s5] ss:$0 sm:$0xff]  ;;  %p1209_p12 = scmp.lt.s32.totalorder %s1207_s21, %s1203_s14 }
  0x45   : > { %509 = vmatpush.bf16.msra.mxu0 %v953_v4  ;;  %p1205_p4 = pnand %p1204_p1, %p1446_p7 }
  0x46   : > { %601 = vmatpush.bf16.msra.mxu1 %v962_v5  ;;  %p1210_p13 = por %p1209_p12, %p1208_p10 }
  0x47   : > { %p1206_p8 = pneg %p1205_p4 }
  0x49   : > { %510 = vmatpush.bf16.msra.mxu0 %v952_v6  ;;  %p1211_p0 = pnand %p1210_p13, %p1206_p8 }
  0x4a   : > { %602 = vmatpush.bf16.msra.mxu1 %v961_v7 }
  0x4d   : > { %511 = vmatpush.bf16.msra.mxu0 %v951_v8 }
  0x4e   : > { %603 = vmatpush.bf16.msra.mxu1 %v960_v9 }
  0x51   : > { %512 = vmatpush.bf16.msra.mxu0 %v950_v10 }
  0x52   : > { %604 = vmatpush.bf16.msra.mxu1 %v959_v11 }
  0x55   : > { %513 = vmatpush.bf16.msra.mxu0 %v949_v12 }
  0x56   : > { %605 = vmatpush.bf16.msra.mxu1 %v958_v13 }
  0x59   : > { %514 = vmatpush.bf16.msra.mxu0 %v948_v14 }
  0x5a   : > { %606 = vmatpush.bf16.msra.mxu1 %v957_v15 }
  0x5c   : > { %515 = vmatmul.bf16.vlgmr.msra.gmra.mxu0 %v947_v16 }
  0x5d   : > { %607 = vmatmul.bf16.vlgmr.msra.gmra.mxu1 %v956_v17 }
  0xd9   : > { %v516_v20 = vpop.f32.mrf.mxu0 }
  0xda   : > { %v608_v21 = vpop.f32.mrf.mxu1  ;;  %v626_v22 = vadd.f32 %v1065_v18, %v516_v20 }
  0xdb   : > { %v638_v23 = vadd.f32 %v1066_v19, %v608_v21 }
  0xdc   : > { %v628_v24 = vmax.f32 %v626_v22, 0.0 }
  0xdd   : > { %v640_v25 = vmax.f32 %v638_v23, 0.0 }
  0xde   : > { %630 = vst [vmem:[%s411_s18] sm:$0xff] %v628_v24 }
  0xdf   : > { %642 = vst [vmem:[%s418_s11] sm:$0xff] %v640_v25 }
  0xe1   : > { %v518_v26 = vpop.f32.mrf.mxu0 }
  0xe2   : > { %v610_v27 = vpop.f32.mrf.mxu1  ;;  %v627_v28 = vadd.f32 %v1065_v18, %v518_v26 }
  0xe3   : > { %v639_v29 = vadd.f32 %v1066_v19, %v610_v27 }
  0xe4   : > { %v629_v30 = vmax.f32 %v627_v28, 0.0 }
  0xe5   : > { %v641_v31 = vmax.f32 %v639_v29, 0.0 }
  0xe6   : > { %631 = vst [vmem:[%s411_s18 + $0x8] sm:$0xff] %v629_v30 }
  0xe7   : > { %643 = vst [vmem:[%s418_s11 + $0x8] sm:$0xff] %v641_v31 }
  0xe8   : > { %1214 = shalt.err (!%p1211_p0)
}
  0xe9   : > { %s1319_s17 = smov 128   ;;  %s1320_s18 = smov 8  }
  0xea   : > { %979 = dma.vmem_to_hbm [thread:$0]  (%p1446_p7), %s1518_s22, 256, %s665_s8, %s645_s24, %s1319_s17, %s1319_s17, %s1320_s18  }
  0xeb   : > { %s650_s19 = scalar_lea.sflag [#allocation12], %s1477_s28  ;;  %s1229_s23 = sshra.s32 %s1522_s3, 4  ;;  %s1230_s23 = int_to_ptr.hbm [resolvable:$true] %s1229_s23 }
  0xec   : > { %s1231_s15 = scalar_lea.hbm %s1230_s23, 16  ;;  %s1235_s20 = scalar_lea.hbm %s1580_s7, 32 }
  0xed   : > { %p1232_p3 = scmp.ne.s32.totalorder %s1230_s23, %s1231_s15  ;;  %p1236_p2 = scmp.lt.s32.totalorder %s1230_s23, %s1580_s7 }
  0xee   : > { %p1237_p1 = scmp.lt.s32.totalorder %s1235_s20, %s1231_s15 }
  0xef   : > { %p1233_p5 = pnand %p1232_p3, %p1446_p7 }
  0xf0   : > { %p1238_p4 = por %p1237_p1, %p1236_p2 }
  0xf1   : > { %p1234_p9 = pneg %p1233_p5 }
  0xf3   : > { %p1239_p8 = pnand %p1238_p4, %p1234_p9 }
  0xf5   : > { %1242 = shalt.err (!%p1239_p8)
}
  0xf6   : > { %980 = dma.vmem_to_hbm [thread:$0]  (%p1446_p7), %s1520_s27, 256, %s1522_s3, %s650_s19, %s1319_s17, %s1319_s17, %s1320_s18  }
  0xf7 PF: > { %s1607_s28 = sld [smem:[#allocation19_spill]]  ;;  %p998_p10 = pnand %p851_p11, %p1406_p6 }
  0xf9   : > { %p999_p12 = pneg %p998_p10 }
  0xfd   : > { %s696_s8 = sand.u32 1, %s1607_s28  }
  0xfe   : > { %s697_s24 = scalar_lea.sflag [#allocation4], %s696_s8 }
  0xff   : > { %1284 = dma.done.wait (%p999_p12), %s697_s24, 256  }
 0x100   : > { %1286 = vsyncadd (%p999_p12), %s697_s24, 4294967040  ;;  %s707_s14 = scalar_lea.sflag [#allocation12], %s696_s8 }
 0x101   : > { %1288 = dma.done.wait (%p999_p12), %s707_s14, 256  }
 0x102   : > { %1290 = vsyncadd (%p999_p12), %s707_s14, 4294967040  ;;  %s31_s29 = sadd.s32 1, %s1313_s29   ;;  %s1609_s13 = sld [smem:[#allocation20_spill]] }
 0x103   : > { %p28_p13 = scmp.ge.s32.totalorder %s31_s29, 4   ;;  %s1610_s26 = sld [smem:[#allocation24_spill]] }
 0x104   : > { %s1611_s27 = sld [smem:[#allocation21_spill]]  ;;  %s1613_s24 = smov %s1297_s25 }
 0x105   : > { %s1612_s28 = sld [smem:[#allocation23_spill]]  ;;  %30 = sbr.rel (!%p28_p13) target bundleno = 14 (0xe), region = 137 }
 0x108   : > { %s1614_s25 = smov %s1609_s13 }
 0x10a   :  { %713 = vsyncpa [#allocation3], 1 }
 0x10b   :  { %715 = vsyncpa [#allocation3 + $0x1], 1 }
 0x10c   :  { %716 = vsyncpa [#allocation6], 1 }
 0x10d   :  { %718 = vsyncpa [#allocation6 + $0x1], 1 }
 0x10e   :  { %719 = vsyncpa [#allocation9], 1 }
 0x10f   :  { %720 = vsyncpa [#allocation4], 1 }
 0x110   :  { %722 = vsyncpa [#allocation4 + $0x1], 1 }
 0x111   :  { %723 = vsyncpa [#allocation12], 1 }
 0x112   :  { %725 = vsyncpa [#allocation12 + $0x1], 1 }

</bundles_post_ra>
